<compile_context>
chip_gen: v7x
topology: tpu7x:2x2x1
jax: 0.10.0
libtpu: 0.0.40
codegen_flags: <defaults>
</compile_context>

<pallas_src>
import functools

import jax
import jax.numpy as jnp
from jax import lax
from jax.experimental import pallas as pl
from jax.experimental.pallas import tpu as pltpu


RNN_UNIT = 32        # OD_RNN_UNIT (hidden size)
_SUBLANE = 8         # f32 sublane count


def _round_up(v, m):
    return ((v + m - 1) // m) * m


def _lstm_chunk_kernel(x_ref, wih_ref, whh_ref, b_ref, h_out_ref,
                       xg_sc, h_sc, c_sc, *, chunk_len, batch_pad):
    """One time-chunk of the LSTM recurrence.

    x_ref     : (Tc*Bp, I)   f32, time-major chunk, batch padded to Bp
    wih_ref   : (I, 4H)      bf16, W_ih^T
    whh_ref   : (H, 4H)      bf16, W_hh^T
    b_ref     : (1, 4H)      f32, b_ih + b_hh
    h_out_ref : (Tc*Bp, H)   f32, hidden states of this chunk (output block)
    xg_sc     : (Tc*Bp, 4H)  f32 VMEM scratch, per-chunk input projections
    h_sc,c_sc : (Bp, H)      f32 VMEM scratch, recurrent state carried across chunks
    """
    H = whh_ref.shape[0]

    # Chunk 0: zero-initialize the carried state (PyTorch passes hx=None).
    @pl.when(pl.program_id(0) == 0)
    def _():
        h_sc[...] = jnp.zeros_like(h_sc)
        c_sc[...] = jnp.zeros_like(c_sc)

    # (1) Hoist the x-projection out of the serial loop: one bf16 MXU matmul over
    #     the whole chunk, f32 accumulation, bias folded in.
    xg_sc[...] = (
        jnp.dot(x_ref[...].astype(jnp.bfloat16), wih_ref[...],
                preferred_element_type=jnp.float32)
        + b_ref[...])

    # (2) Hoist the W_hh load out of the loop: ~8 KiB of bf16, lives in vregs for
    #     the whole chunk instead of being re-loaded from VMEM every timestep.
    whh = whh_ref[...]                                           # (H, 4H) bf16

    # (3) Serial recurrence: one (Bp, H) @ (H, 4H) bf16 matmul per step on the
    #     critical path; h/c carried as f32 values (vregs).
    def step(t, carry):
        h, c = carry
        row = pl.multiple_of(t * batch_pad, _SUBLANE)
        gates = xg_sc[pl.ds(row, batch_pad), :] + jnp.dot(
            h.astype(jnp.bfloat16), whh, preferred_element_type=jnp.float32)

        # Full-vreg EUP pushes, then slice (PyTorch gate order: i, f, g, o).
        sig = jax.nn.sigmoid(gates)
        tnh = jnp.tanh(gates)
        i = sig[:, 0 * H:1 * H]
        f = sig[:, 1 * H:2 * H]
        g = tnh[:, 2 * H:3 * H]
        o = sig[:, 3 * H:4 * H]

        c = f * c + i * g
        h = o * jnp.tanh(c)
        h_out_ref[pl.ds(row, batch_pad), :] = h
        return (h, c)

    h_fin, c_fin = lax.fori_loop(
        0, chunk_len, step, (h_sc[...], c_sc[...]),
        unroll=True if chunk_len <= 16 else 8)

    # Carry the recurrent state to the next chunk.
    h_sc[...] = h_fin
    c_sc[...] = c_fin


def rnn_single_forward(x, params, *, time_chunk=32):
    """x: (B, T, I) batch_first, like the PyTorch module. Returns (B*T, 1)."""
    B, T, I = x.shape
    H = params["w_hh"].shape[1]
    Bp = _round_up(B, _SUBLANE)                  # pad batch to f32 sublane count
    Tc = _round_up(min(time_chunk, T), 2)        # chunk length (even)
    T_pad = _round_up(T, Tc)
    n_chunks = T_pad // Tc

    # Glue: time-major, pad batch/time, flatten to 2D; weight transposes.
    x_tm = jnp.transpose(x, (1, 0, 2)).astype(jnp.float32)       # (T, B, I)
    x_tm = jnp.pad(x_tm, ((0, T_pad - T), (0, Bp - B), (0, 0)))  # (T_pad, Bp, I)
    x_flat = x_tm.reshape(T_pad * Bp, I)                         # (T_pad*Bp, I)

    wih_t = params["w_ih"].T.astype(jnp.bfloat16)                # (I, 4H)
    whh_t = params["w_hh"].T.astype(jnp.bfloat16)                # (H, 4H)
    bias = (params["b_ih"] + params["b_hh"]).astype(jnp.float32)[None, :]

    kernel = functools.partial(_lstm_chunk_kernel, chunk_len=Tc, batch_pad=Bp)

    h_all = pl.pallas_call(
        kernel,
        out_shape=jax.ShapeDtypeStruct((T_pad * Bp, H), jnp.float32),
        grid_spec=pltpu.PrefetchScalarGridSpec(
            num_scalar_prefetch=0,
            grid=(n_chunks,),
            in_specs=[
                pl.BlockSpec((Tc * Bp, I), lambda c: (c, 0)),    # x chunk
                pl.BlockSpec((I, 4 * H), lambda c: (0, 0)),      # W_ih^T (resident)
                pl.BlockSpec((H, 4 * H), lambda c: (0, 0)),      # W_hh^T (resident)
                pl.BlockSpec((1, 4 * H), lambda c: (0, 0)),      # bias   (resident)
            ],
            out_specs=pl.BlockSpec((Tc * Bp, H), lambda c: (c, 0)),
            scratch_shapes=[
                pltpu.VMEM((Tc * Bp, 4 * H), jnp.float32),       # per-chunk x-proj
                pltpu.VMEM((Bp, H), jnp.float32),                # h carry
                pltpu.VMEM((Bp, H), jnp.float32),                # c carry
            ]),
        compiler_params=pltpu.CompilerParams(
            dimension_semantics=("arbitrary",),                  # sequential carry
            vmem_limit_bytes=32 * 1024 * 1024),
    )(x_flat, wih_t, whh_t, bias)

    # Linear(H, 1) head in the XLA wrapper (review option (b)): keeps the kernel's
    # output store H-lane dense and avoids an N=1 MXU matmul inside the kernel.
    h_all = h_all.reshape(T_pad, Bp, H)[:T, :B, :]               # (T, B, H)
    lstm_out = jnp.transpose(h_all, (1, 0, 2)).reshape(B * T, H) # row order b*T + t
    return lstm_out @ params["w_out"].T + params["b_out"]


def rnn_single_reference(x, params, matmul_dtype=jnp.float32):
    """Pure-JAX reference (same math as torch nn.LSTM + nn.Linear).

    matmul_dtype lets us build a reference with the same bf16-operand / f32-accum
    matmul numerics as the kernel, for a tight logic check.
    """
    B, T, I = x.shape
    H = params["w_hh"].shape[1]
    wih_t = params["w_ih"].T.astype(matmul_dtype)
    whh_t = params["w_hh"].T.astype(matmul_dtype)
    bias = params["b_ih"] + params["b_hh"]

    def step(carry, x_t):
        h, c = carry
        gates = (jnp.dot(x_t.astype(matmul_dtype), wih_t,
                         preferred_element_type=jnp.float32)
                 + jnp.dot(h.astype(matmul_dtype), whh_t,
                           preferred_element_type=jnp.float32)
                 + bias)
        i = jax.nn.sigmoid(gates[:, 0 * H:1 * H])
        f = jax.nn.sigmoid(gates[:, 1 * H:2 * H])
        g = jnp.tanh(gates[:, 2 * H:3 * H])
        o = jax.nn.sigmoid(gates[:, 3 * H:4 * H])
        c = f * c + i * g
        h = o * jnp.tanh(c)
        return (h, c), h

    h0 = jnp.zeros((B, H), jnp.float32)
    c0 = jnp.zeros((B, H), jnp.float32)
    _, hs = lax.scan(step, (h0, c0), jnp.transpose(x, (1, 0, 2)))  # (T, B, H)
    lstm_out = jnp.transpose(hs, (1, 0, 2)).reshape(B * T, H)
    return lstm_out @ params["w_out"].T + params["b_out"]


def init_params(key, input_size, hidden):
    """Deterministic init, same shapes as torch nn.LSTM / nn.Linear."""
    ks = jax.random.split(key, 6)
    k = 1.0 / jnp.sqrt(hidden)
    u = lambda kk, shape: jax.random.uniform(kk, shape, jnp.float32, -k, k)
    return {
        "w_ih": u(ks[0], (4 * hidden, input_size)),
        "w_hh": u(ks[1], (4 * hidden, hidden)),
        "b_ih": u(ks[2], (4 * hidden,)),
        "b_hh": u(ks[3], (4 * hidden,)),
        "w_out": u(ks[4], (1, hidden)),
        "b_out": u(ks[5], (1,)),
    }


if __name__ == "__main__":
    B, T, I, H = 2, 8, 4, RNN_UNIT
    key = jax.random.PRNGKey(0)
    kx, kp = jax.random.split(key)

    x = jax.random.normal(kx, (B, T, I), jnp.float32)
    params = init_params(kp, I, H)

    # time_chunk=4 -> grid of 2 chunks, exercising the h/c carry across chunks.
    pred = rnn_single_forward(x, params, time_chunk=4)
    pred = jax.block_until_ready(pred)
    assert pred.shape == (B * T, 1)

    # (a) Logic check against a reference with the same bf16-operand matmul numerics.
    ref_bf16 = rnn_single_reference(x, params, matmul_dtype=jnp.bfloat16)
    err_bf16 = float(jnp.max(jnp.abs(pred - ref_bf16)))
    assert jnp.allclose(pred, ref_bf16, atol=5e-3, rtol=5e-3), err_bf16

    # (b) Drift sanity vs. exact-f32 math (bf16 MXU operands => relaxed tolerance).
    ref_f32 = rnn_single_reference(x, params)
    err_f32 = float(jnp.max(jnp.abs(pred - ref_f32)))
    assert jnp.allclose(pred, ref_f32, atol=5e-2, rtol=5e-2), err_f32

    print("KERNEL_OK")
</pallas_src>

<mosaic_0001>
module attributes {stable_mosaic.version = 11 : i64} {
  func.func @_lstm_chunk_kernel(%arg0: i32, %arg1: memref<32x4xf32, #tpu.memory_space<vmem>>, %arg2: memref<4x128xbf16, #tpu.memory_space<vmem>>, %arg3: memref<32x128xbf16, #tpu.memory_space<vmem>>, %arg4: memref<1x128xf32, #tpu.memory_space<vmem>>, %arg5: memref<32x32xf32, #tpu.memory_space<vmem>>, %arg6: memref<32x128xf32, #tpu.memory_space<vmem>>, %arg7: memref<8x32xf32, #tpu.memory_space<vmem>>, %arg8: memref<8x32xf32, #tpu.memory_space<vmem>>) attributes {dimension_semantics = [#tpu.dimension_semantics<arbitrary>], iteration_bounds = array<i64: 2>, scalar_prefetch = 0 : i64, scratch_operands = 3 : i64, tpu.core_type = #tpu.core_type<tc>, window_params = [{transform_indices = @transform_0, window_bounds = array<i64: 32, 4>}, {pipeline_mode = #tpu.pipeline_mode<synchronous>, transform_indices = @transform_1, window_bounds = array<i64: 4, 128>}, {pipeline_mode = #tpu.pipeline_mode<synchronous>, transform_indices = @transform_2, window_bounds = array<i64: 32, 128>}, {pipeline_mode = #tpu.pipeline_mode<synchronous>, transform_indices = @transform_3, window_bounds = array<i64: 1, 128>}, {transform_indices = @transform_4, window_bounds = array<i64: 32, 32>}]} {
    %c0_i32 = arith.constant 0 : i32
    %0 = arith.cmpi eq, %arg0, %c0_i32 : i32
    %1 = arith.extui %0 : i1 to i32
    %c0_i32_0 = arith.constant 0 : i32
    %2 = arith.cmpi ne, %1, %c0_i32_0 : i32
    scf.if %2 {
      %cst_38 = arith.constant 0.000000e+00 : f32
      %112 = vector.broadcast %cst_38 : f32 to vector<8x32xf32>
      %c0_39 = arith.constant 0 : index
      %c0_40 = arith.constant 0 : index
      %113 = vector.load %arg7[%c0_39, %c0_40] : memref<8x32xf32, #tpu.memory_space<vmem>>, vector<8x32xf32>
      tpu.vector_store %arg7[%c0_39, %c0_40], %112 {strides = array<i32>} : memref<8x32xf32, #tpu.memory_space<vmem>>, vector<8x32xf32>,
      %cst_41 = arith.constant 0.000000e+00 : f32
      %114 = vector.broadcast %cst_41 : f32 to vector<8x32xf32>
      %c0_42 = arith.constant 0 : index
      %c0_43 = arith.constant 0 : index
      %115 = vector.load %arg8[%c0_42, %c0_43] : memref<8x32xf32, #tpu.memory_space<vmem>>, vector<8x32xf32>
      tpu.vector_store %arg8[%c0_42, %c0_43], %114 {strides = array<i32>} : memref<8x32xf32, #tpu.memory_space<vmem>>, vector<8x32xf32>,
    } else {
    }
    %c0 = arith.constant 0 : index
    %c0_1 = arith.constant 0 : index
    %3 = vector.load %arg1[%c0, %c0_1] : memref<32x4xf32, #tpu.memory_space<vmem>>, vector<32x4xf32>
    %4 = arith.truncf %3 : vector<32x4xf32> to vector<32x4xbf16>
    %c0_2 = arith.constant 0 : index
    %c0_3 = arith.constant 0 : index
    %5 = vector.load %arg2[%c0_2, %c0_3] : memref<4x128xbf16, #tpu.memory_space<vmem>>, vector<4x128xbf16>
    %cst = arith.constant dense<0.000000e+00> : vector<32x128xf32>
    %6 = tpu.matmul %4, %5, %cst {dimension_numbers = #tpu.dot_dimension_numbers<[1], [0], [0], [1], [0, 0, 1, 1], [], []>} : vector<32x4xbf16>, vector<4x128xbf16>, vector<32x128xf32> -> vector<32x128xf32>
    %c0_4 = arith.constant 0 : index
    %c0_5 = arith.constant 0 : index
    %7 = vector.load %arg4[%c0_4, %c0_5] : memref<1x128xf32, #tpu.memory_space<vmem>>, vector<1x128xf32>
    %8 = vector.broadcast %7 : vector<1x128xf32> to vector<32x128xf32>
    %9 = arith.addf %6, %8 : vector<32x128xf32>
    %c0_6 = arith.constant 0 : index
    %c0_7 = arith.constant 0 : index
    %10 = vector.load %arg6[%c0_6, %c0_7] : memref<32x128xf32, #tpu.memory_space<vmem>>, vector<32x128xf32>
    tpu.vector_store %arg6[%c0_6, %c0_7], %9 {strides = array<i32>} : memref<32x128xf32, #tpu.memory_space<vmem>>, vector<32x128xf32>,
    %c0_8 = arith.constant 0 : index
    %c0_9 = arith.constant 0 : index
    %11 = vector.load %arg3[%c0_8, %c0_9] : memref<32x128xbf16, #tpu.memory_space<vmem>>, vector<32x128xbf16>
    %c0_10 = arith.constant 0 : index
    %c0_11 = arith.constant 0 : index
    %12 = vector.load %arg7[%c0_10, %c0_11] : memref<8x32xf32, #tpu.memory_space<vmem>>, vector<8x32xf32>
    %c0_12 = arith.constant 0 : index
    %c0_13 = arith.constant 0 : index
    %13 = vector.load %arg8[%c0_12, %c0_13] : memref<8x32xf32, #tpu.memory_space<vmem>>, vector<8x32xf32>
    %c0_i32_14 = arith.constant 0 : i32
    %c8_i32 = arith.constant 8 : i32
    %14 = arith.muli %c0_i32_14, %c8_i32 : i32
    %15 = tpu.assume_multiple %14, 8 : i32
    %16 = arith.index_cast %15 : i32 to index
    %c0_15 = arith.constant 0 : index
    %17 = vector.load %arg6[%16, %c0_15] : memref<32x128xf32, #tpu.memory_space<vmem>>, vector<8x128xf32>
    %18 = arith.truncf %12 : vector<8x32xf32> to vector<8x32xbf16>
    %cst_16 = arith.constant dense<0.000000e+00> : vector<8x128xf32>
    %19 = tpu.matmul %18, %11, %cst_16 {dimension_numbers = #tpu.dot_dimension_numbers<[1], [0], [0], [1], [0, 0, 1, 1], [], []>} : vector<8x32xbf16>, vector<32x128xbf16>, vector<8x128xf32> -> vector<8x128xf32>
    %20 = arith.addf %17, %19 : vector<8x128xf32>
    %21 = arith.negf %20 : vector<8x128xf32>
    %22 = math.exp %21 : vector<8x128xf32>
    %cst_17 = arith.constant 1.000000e+00 : f32
    %23 = vector.broadcast %cst_17 : f32 to vector<8x128xf32>
    %24 = arith.addf %23, %22 : vector<8x128xf32>
    %25 = arith.divf %23, %24 : vector<8x128xf32>
    %26 = math.tanh %20 : vector<8x128xf32>
    %27 = vector.extract_strided_slice %25 {offsets = [0, 0], sizes = [8, 32], strides = [1, 1]} : vector<8x128xf32> to vector<8x32xf32>
    %28 = vector.extract_strided_slice %25 {offsets = [0, 32], sizes = [8, 32], strides = [1, 1]} : vector<8x128xf32> to vector<8x32xf32>
    %29 = vector.extract_strided_slice %26 {offsets = [0, 64], sizes = [8, 32], strides = [1, 1]} : vector<8x128xf32> to vector<8x32xf32>
    %30 = vector.extract_strided_slice %25 {offsets = [0, 96], sizes = [8, 32], strides = [1, 1]} : vector<8x128xf32> to vector<8x32xf32>
    %31 = arith.mulf %28, %13 : vector<8x32xf32>
    %32 = arith.mulf %27, %29 : vector<8x32xf32>
    %33 = arith.addf %31, %32 : vector<8x32xf32>
    %34 = math.tanh %33 : vector<8x32xf32>
    %35 = arith.mulf %30, %34 : vector<8x32xf32>
    %36 = arith.index_cast %15 : i32 to index
    %c0_18 = arith.constant 0 : index
    %37 = vector.load %arg5[%36, %c0_18] : memref<32x32xf32, #tpu.memory_space<vmem>>, vector<8x32xf32>
    tpu.vector_store %arg5[%36, %c0_18], %35 {strides = array<i32>} : memref<32x32xf32, #tpu.memory_space<vmem>>, vector<8x32xf32>,
    %c1_i32 = arith.constant 1 : i32
    %c8_i32_19 = arith.constant 8 : i32
    %38 = arith.muli %c1_i32, %c8_i32_19 : i32
    %39 = tpu.assume_multiple %38, 8 : i32
    %40 = arith.index_cast %39 : i32 to index
    %c0_20 = arith.constant 0 : index
    %41 = vector.load %arg6[%40, %c0_20] : memref<32x128xf32, #tpu.memory_space<vmem>>, vector<8x128xf32>
    %42 = arith.truncf %35 : vector<8x32xf32> to vector<8x32xbf16>
    %cst_21 = arith.constant dense<0.000000e+00> : vector<8x128xf32>
    %43 = tpu.matmul %42, %11, %cst_21 {dimension_numbers = #tpu.dot_dimension_numbers<[1], [0], [0], [1], [0, 0, 1, 1], [], []>} : vector<8x32xbf16>, vector<32x128xbf16>, vector<8x128xf32> -> vector<8x128xf32>
    %44 = arith.addf %41, %43 : vector<8x128xf32>
    %45 = arith.negf %44 : vector<8x128xf32>
    %46 = math.exp %45 : vector<8x128xf32>
    %cst_22 = arith.constant 1.000000e+00 : f32
    %47 = vector.broadcast %cst_22 : f32 to vector<8x128xf32>
    %48 = arith.addf %47, %46 : vector<8x128xf32>
    %49 = arith.divf %47, %48 : vector<8x128xf32>
    %50 = math.tanh %44 : vector<8x128xf32>
    %51 = vector.extract_strided_slice %49 {offsets = [0, 0], sizes = [8, 32], strides = [1, 1]} : vector<8x128xf32> to vector<8x32xf32>
    %52 = vector.extract_strided_slice %49 {offsets = [0, 32], sizes = [8, 32], strides = [1, 1]} : vector<8x128xf32> to vector<8x32xf32>
    %53 = vector.extract_strided_slice %50 {offsets = [0, 64], sizes = [8, 32], strides = [1, 1]} : vector<8x128xf32> to vector<8x32xf32>
    %54 = vector.extract_strided_slice %49 {offsets = [0, 96], sizes = [8, 32], strides = [1, 1]} : vector<8x128xf32> to vector<8x32xf32>
    %55 = arith.mulf %52, %33 : vector<8x32xf32>
    %56 = arith.mulf %51, %53 : vector<8x32xf32>
    %57 = arith.addf %55, %56 : vector<8x32xf32>
    %58 = math.tanh %57 : vector<8x32xf32>
    %59 = arith.mulf %54, %58 : vector<8x32xf32>
    %60 = arith.index_cast %39 : i32 to index
    %c0_23 = arith.constant 0 : index
    %61 = vector.load %arg5[%60, %c0_23] : memref<32x32xf32, #tpu.memory_space<vmem>>, vector<8x32xf32>
    tpu.vector_store %arg5[%60, %c0_23], %59 {strides = array<i32>} : memref<32x32xf32, #tpu.memory_space<vmem>>, vector<8x32xf32>,
    %c2_i32 = arith.constant 2 : i32
    %c8_i32_24 = arith.constant 8 : i32
    %62 = arith.muli %c2_i32, %c8_i32_24 : i32
    %63 = tpu.assume_multiple %62, 8 : i32
    %64 = arith.index_cast %63 : i32 to index
    %c0_25 = arith.constant 0 : index
    %65 = vector.load %arg6[%64, %c0_25] : memref<32x128xf32, #tpu.memory_space<vmem>>, vector<8x128xf32>
    %66 = arith.truncf %59 : vector<8x32xf32> to vector<8x32xbf16>
    %cst_26 = arith.constant dense<0.000000e+00> : vector<8x128xf32>
    %67 = tpu.matmul %66, %11, %cst_26 {dimension_numbers = #tpu.dot_dimension_numbers<[1], [0], [0], [1], [0, 0, 1, 1], [], []>} : vector<8x32xbf16>, vector<32x128xbf16>, vector<8x128xf32> -> vector<8x128xf32>
    %68 = arith.addf %65, %67 : vector<8x128xf32>
    %69 = arith.negf %68 : vector<8x128xf32>
    %70 = math.exp %69 : vector<8x128xf32>
    %cst_27 = arith.constant 1.000000e+00 : f32
    %71 = vector.broadcast %cst_27 : f32 to vector<8x128xf32>
    %72 = arith.addf %71, %70 : vector<8x128xf32>
    %73 = arith.divf %71, %72 : vector<8x128xf32>
    %74 = math.tanh %68 : vector<8x128xf32>
    %75 = vector.extract_strided_slice %73 {offsets = [0, 0], sizes = [8, 32], strides = [1, 1]} : vector<8x128xf32> to vector<8x32xf32>
    %76 = vector.extract_strided_slice %73 {offsets = [0, 32], sizes = [8, 32], strides = [1, 1]} : vector<8x128xf32> to vector<8x32xf32>
    %77 = vector.extract_strided_slice %74 {offsets = [0, 64], sizes = [8, 32], strides = [1, 1]} : vector<8x128xf32> to vector<8x32xf32>
    %78 = vector.extract_strided_slice %73 {offsets = [0, 96], sizes = [8, 32], strides = [1, 1]} : vector<8x128xf32> to vector<8x32xf32>
    %79 = arith.mulf %76, %57 : vector<8x32xf32>
    %80 = arith.mulf %75, %77 : vector<8x32xf32>
    %81 = arith.addf %79, %80 : vector<8x32xf32>
    %82 = math.tanh %81 : vector<8x32xf32>
    %83 = arith.mulf %78, %82 : vector<8x32xf32>
    %84 = arith.index_cast %63 : i32 to index
    %c0_28 = arith.constant 0 : index
    %85 = vector.load %arg5[%84, %c0_28] : memref<32x32xf32, #tpu.memory_space<vmem>>, vector<8x32xf32>
    tpu.vector_store %arg5[%84, %c0_28], %83 {strides = array<i32>} : memref<32x32xf32, #tpu.memory_space<vmem>>, vector<8x32xf32>,
    %c3_i32 = arith.constant 3 : i32
    %c8_i32_29 = arith.constant 8 : i32
    %86 = arith.muli %c3_i32, %c8_i32_29 : i32
    %87 = tpu.assume_multiple %86, 8 : i32
    %88 = arith.index_cast %87 : i32 to index
    %c0_30 = arith.constant 0 : index
    %89 = vector.load %arg6[%88, %c0_30] : memref<32x128xf32, #tpu.memory_space<vmem>>, vector<8x128xf32>
    %90 = arith.truncf %83 : vector<8x32xf32> to vector<8x32xbf16>
    %cst_31 = arith.constant dense<0.000000e+00> : vector<8x128xf32>
    %91 = tpu.matmul %90, %11, %cst_31 {dimension_numbers = #tpu.dot_dimension_numbers<[1], [0], [0], [1], [0, 0, 1, 1], [], []>} : vector<8x32xbf16>, vector<32x128xbf16>, vector<8x128xf32> -> vector<8x128xf32>
    %92 = arith.addf %89, %91 : vector<8x128xf32>
    %93 = arith.negf %92 : vector<8x128xf32>
    %94 = math.exp %93 : vector<8x128xf32>
    %cst_32 = arith.constant 1.000000e+00 : f32
    %95 = vector.broadcast %cst_32 : f32 to vector<8x128xf32>
    %96 = arith.addf %95, %94 : vector<8x128xf32>
    %97 = arith.divf %95, %96 : vector<8x128xf32>
    %98 = math.tanh %92 : vector<8x128xf32>
    %99 = vector.extract_strided_slice %97 {offsets = [0, 0], sizes = [8, 32], strides = [1, 1]} : vector<8x128xf32> to vector<8x32xf32>
    %100 = vector.extract_strided_slice %97 {offsets = [0, 32], sizes = [8, 32], strides = [1, 1]} : vector<8x128xf32> to vector<8x32xf32>
    %101 = vector.extract_strided_slice %98 {offsets = [0, 64], sizes = [8, 32], strides = [1, 1]} : vector<8x128xf32> to vector<8x32xf32>
    %102 = vector.extract_strided_slice %97 {offsets = [0, 96], sizes = [8, 32], strides = [1, 1]} : vector<8x128xf32> to vector<8x32xf32>
    %103 = arith.mulf %100, %81 : vector<8x32xf32>
    %104 = arith.mulf %99, %101 : vector<8x32xf32>
    %105 = arith.addf %103, %104 : vector<8x32xf32>
    %106 = math.tanh %105 : vector<8x32xf32>
    %107 = arith.mulf %102, %106 : vector<8x32xf32>
    %108 = arith.index_cast %87 : i32 to index
    %c0_33 = arith.constant 0 : index
    %109 = vector.load %arg5[%108, %c0_33] : memref<32x32xf32, #tpu.memory_space<vmem>>, vector<8x32xf32>
    tpu.vector_store %arg5[%108, %c0_33], %107 {strides = array<i32>} : memref<32x32xf32, #tpu.memory_space<vmem>>, vector<8x32xf32>,
    %c4_i32 = arith.constant 4 : i32
    %c0_34 = arith.constant 0 : index
    %c0_35 = arith.constant 0 : index
    %110 = vector.load %arg7[%c0_34, %c0_35] : memref<8x32xf32, #tpu.memory_space<vmem>>, vector<8x32xf32>
    tpu.vector_store %arg7[%c0_34, %c0_35], %107 {strides = array<i32>} : memref<8x32xf32, #tpu.memory_space<vmem>>, vector<8x32xf32>,
    %c0_36 = arith.constant 0 : index
    %c0_37 = arith.constant 0 : index
    %111 = vector.load %arg8[%c0_36, %c0_37] : memref<8x32xf32, #tpu.memory_space<vmem>>, vector<8x32xf32>
    tpu.vector_store %arg8[%c0_36, %c0_37], %105 {strides = array<i32>} : memref<8x32xf32, #tpu.memory_space<vmem>>, vector<8x32xf32>,
    return
  }
  func.func @transform_0(%arg0: i32) -> (i32, i32) {
    %c0_i32 = arith.constant 0 : i32
    %c0_i32_0 = arith.constant 0 : i32
    return %arg0, %c0_i32 : i32, i32
  }
  func.func @transform_1(%arg0: i32) -> (i32, i32) {
    %c0_i32 = arith.constant 0 : i32
    %c0_i32_0 = arith.constant 0 : i32
    %c0_i32_1 = arith.constant 0 : i32
    return %c0_i32, %c0_i32_0 : i32, i32
  }
  func.func @transform_2(%arg0: i32) -> (i32, i32) {
    %c0_i32 = arith.constant 0 : i32
    %c0_i32_0 = arith.constant 0 : i32
    %c0_i32_1 = arith.constant 0 : i32
    return %c0_i32, %c0_i32_0 : i32, i32
  }
  func.func @transform_3(%arg0: i32) -> (i32, i32) {
    %c0_i32 = arith.constant 0 : i32
    %c0_i32_0 = arith.constant 0 : i32
    %c0_i32_1 = arith.constant 0 : i32
    return %c0_i32, %c0_i32_0 : i32, i32
  }
  func.func @transform_4(%arg0: i32) -> (i32, i32) {
    %c0_i32 = arith.constant 0 : i32
    %c0_i32_0 = arith.constant 0 : i32
    return %arg0, %c0_i32 : i32, i32
  }
}

</mosaic_0001>

<bundles_post_ra>
// kernel: tpu_custom_call.1
= control target key start
LH: loop header
LB: loop body
LE: loop exit
PB: predicated region body
PF: predicated region fallthrough
CT: control target
= control target key end

     0   :  { %s856_s15 = smov 0   ;;  %s960_s0 = inlined_call_operand.vmem [shape: f32[64,4], index: 0, kind: input, shape index: {}]   ;;  %s961_s1 = inlined_call_operand.vmem [shape: bf16[4,128], index: 1, kind: input, shape index: {}]   ;;  %s962_s2 = inlined_call_operand.vmem [shape: bf16[32,128], index: 2, kind: input, shape index: {}]   ;;  %s963_s3 = inlined_call_operand.vmem [shape: f32[1,128], index: 3, kind: input, shape index: {}]   ;;  %s964_s4 = inlined_call_operand.vmem [shape: f32[64,32], index: 4, kind: output, shape index: {}]  }
   0x1 LB: > { %s687_s16 = sadd.s32 4294967295, %s823_s15   ;;  %p691_p0 = scmp.ge.s32.totalorder %s823_s15, 1  ;;  %s823_s15 = sphi %s856_s15, %s14_s15  }
   0x2   : > { %p163_p1 = scmp.lt.s32.totalorder %s823_s15, 3 }
   0x4   : > { %p164_p2 = pnand %p691_p0, %p163_p1 }
   0x5   : > { %s692_s17 = sshll.u32 (!%p164_p2), %s687_s16, 2  ;;  %p696_p4 = scmp.ne.s32.totalorder (!%p164_p2), %s687_s16, 0 }
   0x6   : > { %167 = sbr.rel (%p164_p2) target bundleno = 2844 (0xb1c), region = 36  ;;  %p190_p3 = scmp.lt.s32.totalorder (!%p164_p2), %s692_s17, 7 }
   0xd   : > { %s966_s17 = smov (!%p190_p3, %s692_s17), 7  ;;  %205 = sbr.rel (%p696_p4) target bundleno = 20 (0x14), region = 40 }
   0xe   : > { %s693_s18 = sshll.u32 %s966_s17, 3  ;;  %vm206_vm0 = vcmask (!%p696_p4), 261120   ;;  %v825_v0 = vmov (!%p696_p4), 0.0  }
   0xf   : > { %s193_s21 = scalar_lea.vmem %s960_s0, %s693_s18  ;;  %s870_s24 = scalar_lea.vmem %s964_s4, %s693_s18  ;;  %207 = vst.msk [vmem:[#allocation3] sm:$0xff] (!%p696_p4), %vm206_vm0, %v825_v0  ;;  %208 = vst.msk [vmem:[#allocation4] sm:$0xff] (!%p696_p4), %vm206_vm0, %v825_v0 }
  0x14 PF: > { %v215_v1 = vld [vmem:[%s961_s1] sm:$0x3]  ;;  %vm230_vm1 = vcmask 1041408   ;;  %v826_v3 = vmov 0.0   ;;  %v210_v6 = vld [vmem:[%s193_s21 + $0x8] sm:$0xff]  ;;  %vm223_vm2 = vcmask 31744  }
  0x15   : > { %768 = vmatprep.subr.msk.bf16.mxu0 %vm230_vm1, %v215_v1  ;;  %v232_v2 = vsel %vm230_vm1, %v215_v1, 0  ;;  %736 = vmatprep.subr.bf16.mxu1 %v826_v3  ;;  %v879_v4 = vld [vmem:[%s962_s2] sm:$0xff]   ;;  %v211_v7 = vld [vmem:[%s193_s21 + $0x10] sm:$0xff]  ;;  %v212_v8 = vld [vmem:[%s193_s21 + $0x18] sm:$0xff]  ;;  %vm827_vm3 = vmmov 0   ;;  %vm307_vm4 = vcmask 261120  }
  0x16   : > { %v209_v5 = vld [vmem:[%s193_s21] sm:$0xff]  ;;  %731 = vmatpush3.bf16.msra.mxu0 %v232_v2  ;;  %737 = vmatpush3.bf16.msra.mxu1 %v879_v4  ;;  %v214_v10 = vpack.c.bf16 %v212_v8, %v211_v7  ;;  %v885_v11 = vld [vmem:[%s962_s2 + $0x8] sm:$0xff]   ;;  %s828_s7 = smov 64   ;;  %s829_s8 = smov 32  }
  0x17   : > { %v213_v9 = vpack.c.bf16 %v210_v6, %v209_v5  ;;  %740 = vmatprep.mubr.msk.bf16.mxu1 %vm827_vm3, %v826_v3  ;;  %738 = vmatprep.subr.bf16.mxu1 %v826_v3  ;;  %v291_v12 = vld [vmem:[#allocation3] sm:$0xff]  ;;  %v292_v29 = vld [vmem:[#allocation4] sm:$0xff]  ;;  %s830_s9 = smov 96  }
  0x18   : > { %744 = vmatprep.subr.bf16.mxu0 %v826_v3  ;;  %v294_v13 = vpack.c.bf16 %v291_v12, %v291_v12  ;;  %v697_v14 = vld [vmem:[%s963_s3] ss:$0 sm:$0xff] }
  0x19   : > { %732 = vmatprep.mubr.msk.bf16.mxu0 %vm223_vm2, %v213_v9 }
  0x1a   : > { %733 = vmatmul.mubr.msk.bf16.vlgmr.msra.gmra.mrb[0].mxu0 %vm223_vm2, %v214_v10  ;;  %739 = vmatpush3.bf16.msra.mxu1 %v885_v11 }
  0x1b   : > { %745 = vmatpush3.bf16.msra.mxu0 %v879_v4  ;;  %748 = vmatprep.mubr.msk.bf16.mxu0 %vm827_vm3, %v826_v3 }
  0x1c   : > { %746 = vmatprep.subr.bf16.mxu0 %v826_v3  ;;  %752 = vmatprep.subr.bf16.mxu1 %v826_v3 }
  0x1d   : > { %741 = vmatmul.mubr.msk.bf16.vlgmr.msra.gmra.mrb[0].mxu1 %vm307_vm4, %v294_v13 }
  0x1e   : > { %753 = vmatpush3.bf16.msra.mxu1 %v879_v4  ;;  %756 = vmatprep.mubr.msk.bf16.mxu1 %vm827_vm3, %v826_v3 }
  0x1f   : > { %747 = vmatpush3.bf16.msra.mxu0 %v885_v11  ;;  %754 = vmatprep.subr.bf16.mxu1 %v826_v3 }
  0x20   : > { %760 = vmatprep.subr.bf16.mxu0 %v826_v3 }
  0x22   : > { %755 = vmatpush3.bf16.msra.mxu1 %v885_v11 }
  0xed   : > { %v734_v15 = vpop.f32.mrb[0].mxu0 }
  0xee   : > { %v908_v16 = vadd.f32 %v734_v15, %v697_v14  ;;  %v268_v17 = vpop.f32.mrb[1].mxu0 }
  0xef   : > { %v269_v18 = vadd.f32 %v697_v14, %v268_v17  ;;  %v735_v19 = vpop.f32.mrb[2].mxu0 }
  0xf0   : > { %v910_v20 = vadd.f32 %v735_v19, %v697_v14  ;;  %v271_v21 = vpop.f32.mrb[3].mxu0  ;;  %v345_v23 = vpop.f32.mrb[0].mxu1 }
  0xf1   : > { %v272_v22 = vadd.f32 %v697_v14, %v271_v21  ;;  %v351_v24 = vadd.f32 %v345_v23, %v269_v18  ;;  %v742_v25 = vpop.f32.mrb[1].mxu1 }
  0xf2   : > { %v348_v26 = vpop.f32.mrb[2].mxu1 }
  0xf3   : > { %785 = vtanh.f32 %v351_v24  ;;  %v743_v27 = vpop.f32.mrb[3].mxu1  ;;  %v703_v30 = vmul.f32 -1.442695, %v351_v24 }
  0xf5   : > { %787 = vpow2.f32 %v703_v30 }
  0xfd   : > { %v786_v28 = vpop.eup %785 }
  0xfe   : > { %365 = vrot.lane.b32.xlu0 %v786_v28, %s828_s7 }
  0xff   : > { %v788_v31 = vpop.eup %787 }
 0x100   : > { %v355_v32 = vadd.f32 1.0, %v788_v31 }
 0x102   : > { %360 = vrot.lane.b32.xlu0 %v292_v29, %s829_s8  ;;  %789 = vrcp.f32 %v355_v32 }
 0x10c   : > { %v790_v33 = vpop.eup %789 }
 0x170   : > { %v366_v34 = vpop.permute.xlu0 %365 }
 0x171   : > { %v368_v35 = vmul.f32 %v790_v33, %v366_v34 }
 0x173   : > { %370 = vrot.lane.b32.xlu1 %v368_v35, %s829_s8 }
 0x174   : > { %v361_v36 = vpop.permute.xlu0 %360 }
 0x175   : > { %v363_v37 = vmul.f32 %v790_v33, %v361_v36 }
 0x1e5   : > { %v371_v38 = vpop.permute.xlu1 %370 }
 0x1e6   : > { %v373_v39 = vadd.f32 %v371_v38, %v363_v37 }
 0x1e8   : > { %791 = vtanh.f32 %v373_v39 }
 0x1f2   : > { %v792_v40 = vpop.eup %791 }
 0x1f3   : > { %376 = vrot.lane.b32.xlu1 %v792_v40, %s828_s7 }
 0x265   : > { %v377_v41 = vpop.permute.xlu1 %376 }
 0x266   : > { %v916_v42 = vmul.f32 %v790_v33, %v377_v41 }
 0x268   : > { %v387_v43 = vpack.c.bf16 %v916_v42, %v916_v42 }
 0x26a   : > { %389 = vrot.lane.b32.xlu0 %v387_v43, %s829_s8 }
 0x2dc   : > { %v390_v44 = vpop.permute.xlu0 %389 }
 0x2dd   : > { %749 = vmatmul.mubr.msk.bf16.vlgmr.msra.gmra.mrb[4].mxu0 %vm307_vm4, %v390_v44 }
 0x2de   : > { %761 = vmatpush3.bf16.msra.mxu0 %v879_v4  ;;  %764 = vmatprep.mubr.msk.bf16.mxu0 %vm827_vm3, %v826_v3 }
 0x2df   : > { %762 = vmatprep.subr.bf16.mxu0 %v826_v3 }
 0x2e2   : > { %763 = vmatpush3.bf16.msra.mxu0 %v885_v11 }
 0x3b0   : > { %v428_v45 = vpop.f32.mrb[4].mxu0 }
 0x3b1   : > { %v434_v46 = vadd.f32 %v428_v45, %v272_v22  ;;  %v750_v47 = vpop.f32.mrb[5].mxu0 }
 0x3b2   : > { %v431_v48 = vpop.f32.mrb[6].mxu0 }
 0x3b3   : > { %793 = vtanh.f32 %v434_v46  ;;  %v751_v49 = vpop.f32.mrb[7].mxu0  ;;  %v705_v51 = vmul.f32 -1.442695, %v434_v46 }
 0x3b5   : > { %795 = vpow2.f32 %v705_v51 }
 0x3bd   : > { %v794_v50 = vpop.eup %793 }
 0x3be   : > { %444 = vrot.lane.b32.xlu1 %v794_v50, %s828_s7 }
 0x3bf   : > { %v796_v52 = vpop.eup %795 }
 0x3c0   : > { %v438_v53 = vadd.f32 1.0, %v796_v52 }
 0x3c2   : > { %797 = vrcp.f32 %v438_v53 }
 0x3cc   : > { %v798_v54 = vpop.eup %797 }
 0x3cd   : > { %v442_v57 = vmul.f32 %v798_v54, %v373_v39 }
 0x430   : > { %v445_v55 = vpop.permute.xlu1 %444 }
 0x431   : > { %v447_v56 = vmul.f32 %v798_v54, %v445_v55 }
 0x433   : > { %449 = vrot.lane.b32.xlu0 %v447_v56, %s829_s8 }
 0x4a5   : > { %v450_v58 = vpop.permute.xlu0 %449 }
 0x4a6   : > { %v452_v59 = vadd.f32 %v450_v58, %v442_v57 }
 0x4a8   : > { %799 = vtanh.f32 %v452_v59 }
 0x4b2   : > { %v800_v60 = vpop.eup %799 }
 0x4b3   : > { %455 = vrot.lane.b32.xlu1 %v800_v60, %s828_s7 }
 0x525   : > { %v456_v61 = vpop.permute.xlu1 %455 }
 0x526   : > { %v458_v62 = vmul.f32 %v798_v54, %v456_v61 }
 0x528   : > { %v467_v63 = vpack.c.bf16 %v458_v62, %v458_v62 }
 0x52a   : > { %469 = vrot.lane.b32.xlu0 %v467_v63, %s829_s8 }
 0x59c   : > { %v470_v0 = vpop.permute.xlu0 %469 }
 0x59d   : > { %757 = vmatmul.mubr.msk.bf16.vlgmr.msra.gmra.mrb[4].mxu1 %vm307_vm4, %v470_v0 }
 0x670   : > { %v508_v1 = vpop.f32.mrb[4].mxu1 }
 0x671   : > { %v514_v2 = vadd.f32 %v508_v1, %v908_v16  ;;  %v758_v3 = vpop.f32.mrb[5].mxu1 }
 0x672   : > { %v511_v4 = vpop.f32.mrb[6].mxu1 }
 0x673   : > { %801 = vtanh.f32 %v514_v2  ;;  %v759_v5 = vpop.f32.mrb[7].mxu1  ;;  %v708_v7 = vmul.f32 -1.442695, %v514_v2 }
 0x675   : > { %803 = vpow2.f32 %v708_v7 }
 0x67d   : > { %v802_v6 = vpop.eup %801 }
 0x67e   : > { %524 = vrot.lane.b32.xlu1 %v802_v6, %s828_s7 }
 0x67f   : > { %v804_v8 = vpop.eup %803 }
 0x680   : > { %v518_v9 = vadd.f32 1.0, %v804_v8 }
 0x682   : > { %805 = vrcp.f32 %v518_v9 }
 0x68c   : > { %v806_v10 = vpop.eup %805 }
 0x68d   : > { %v522_v13 = vmul.f32 %v806_v10, %v452_v59 }
 0x6f0   : > { %v525_v11 = vpop.permute.xlu1 %524 }
 0x6f1   : > { %v527_v12 = vmul.f32 %v806_v10, %v525_v11 }
 0x6f3   : > { %529 = vrot.lane.b32.xlu0 %v527_v12, %s829_s8 }
 0x765   : > { %v530_v14 = vpop.permute.xlu0 %529 }
 0x766   : > { %v532_v15 = vadd.f32 %v530_v14, %v522_v13 }
 0x768   : > { %807 = vtanh.f32 %v532_v15 }
 0x772   : > { %v808_v16 = vpop.eup %807 }
 0x773   : > { %535 = vrot.lane.b32.xlu1 %v808_v16, %s828_s7 }
 0x7e5   : > { %v536_v17 = vpop.permute.xlu1 %535 }
 0x7e6   : > { %v538_v18 = vmul.f32 %v806_v10, %v536_v17 }
 0x7e8   : > { %v547_v19 = vpack.c.bf16 %v538_v18, %v538_v18 }
 0x7ea   : > { %549 = vrot.lane.b32.xlu0 %v547_v19, %s829_s8 }
 0x85c   : > { %v550_v21 = vpop.permute.xlu0 %549 }
 0x85d   : > { %765 = vmatmul.mubr.msk.bf16.vlgmr.msra.gmra.mrb[8].mxu0 %vm307_vm4, %v550_v21 }
 0x930   : > { %v588_v22 = vpop.f32.mrb[8].mxu0 }
 0x931   : > { %v594_v23 = vadd.f32 %v588_v22, %v910_v20  ;;  %v766_v24 = vpop.f32.mrb[9].mxu0 }
 0x932   : > { %v591_v25 = vpop.f32.mrb[10].mxu0 }
 0x933   : > { %809 = vtanh.f32 %v594_v23  ;;  %v767_v26 = vpop.f32.mrb[11].mxu0  ;;  %v711_v28 = vmul.f32 -1.442695, %v594_v23 }
 0x935   : > { %811 = vpow2.f32 %v711_v28 }
 0x93d   : > { %v810_v27 = vpop.eup %809 }
 0x93e   : > { %604 = vrot.lane.b32.xlu1 %v810_v27, %s828_s7 }
 0x93f   : > { %v812_v29 = vpop.eup %811 }
 0x940   : > { %v598_v30 = vadd.f32 1.0, %v812_v29 }
 0x942   : > { %813 = vrcp.f32 %v598_v30 }
 0x94c   : > { %v814_v31 = vpop.eup %813 }
 0x94d   : > { %v602_v20 = vmul.f32 %v814_v31, %v532_v15 }
 0x9b0   : > { %v605_v32 = vpop.permute.xlu1 %604 }
 0x9b1   : > { %v607_v33 = vmul.f32 %v814_v31, %v605_v32 }
 0x9b3   : > { %609 = vrot.lane.b32.xlu0 %v607_v33, %s829_s8 }
 0x9b7   : > { %381 = vrot.lane.b32.xlu0 %v916_v42, %s829_s8 }
 0x9bb   : > { %540 = vrot.lane.b32.xlu0 %v538_v18, %s829_s8 }
 0xa25   : > { %v610_v34 = vpop.permute.xlu0 %609 }
 0xa26   : > { %v612_v35 = vadd.f32 %v610_v34, %v602_v20 }
 0xa28   : > { %815 = vtanh.f32 %v612_v35  ;;  %627 = vrot.lane.b32.xlu0 %v612_v35, %s830_s9 }
 0xa29   : > { %v382_v36 = vpop.permute.xlu0 %381 }
 0xa2a   : > { %384 = vst.msk [vmem:[%s870_s24] sm:$0xff] %vm307_vm4, %v382_v36 }
 0xa2d   : > { %v541_v38 = vpop.permute.xlu0 %540 }
 0xa2e   : > { %709 = vst.msk [vmem:[%s870_s24 + $0x10] sm:$0xff] %vm307_vm4, %v541_v38 }
 0xa32   : > { %v816_v37 = vpop.eup %815 }
 0xa33   : > { %615 = vrot.lane.b32.xlu1 %v816_v37, %s828_s7 }
 0xa37   : > { %460 = vrot.lane.b32.xlu1 %v458_v62, %s829_s8 }
 0xa9a   : > { %v628_v39 = vpop.permute.xlu0 %627 }
 0xa9b   : > { %630 = vst.msk [vmem:[#allocation4] sm:$0xff] %vm307_vm4, %v628_v39 }
 0xaa5   : > { %v616_v40 = vpop.permute.xlu1 %615 }
 0xaa6   : > { %v618_v41 = vmul.f32 %v814_v31, %v616_v40 }
 0xaa8   : > { %620 = vrot.lane.b32.xlu1 %v618_v41, %s829_s8 }
 0xaa9   : > { %v461_v42 = vpop.permute.xlu1 %460 }
 0xaaa   : > { %706 = vst.msk [vmem:[%s870_s24 + $0x8] sm:$0xff] %vm307_vm4, %v461_v42 }
 0xb1a   : > { %v621_v43 = vpop.permute.xlu1 %620 }
 0xb1b   : > { %712 = vst.msk [vmem:[%s870_s24 + $0x18] sm:$0xff] %vm307_vm4, %v621_v43  ;;  %625 = vst.msk [vmem:[#allocation3] sm:$0xff] %vm307_vm4, %v621_v43 }
 0xb1c PF: > { %s14_s15 = sadd.s32 1, %s823_s15  }
 0xb1d   : > { %p11_p5 = scmp.ge.s32.totalorder %s14_s15, 4  }
 0xb1f   :  { %13 = sbr.rel (!%p11_p5) target bundleno = 1 (0x1), region = 76 }

</bundles_post_ra>
